<compile_context>
chip_gen: v5e
topology: v5e:2x2
jax: 0.10.0
libtpu: 0.0.40
codegen_flags: <defaults>
</compile_context>

<pallas_src>
import numpy as np
import jax
import jax.numpy as jnp
from jax.experimental import pallas as pl
from jax.experimental.pallas import tpu as pltpu


# ----------------------------------------------------------------------------
# Fused Pallas kernel (built per static configuration)
# ----------------------------------------------------------------------------
def _make_fused_nice_kernel(n_layers, n_mid, mask_configs, half, d):
    """Returns a kernel computing the full NICE forward log-likelihood.

    Static configuration (layer count, #mid layers, per-layer mask parity,
    feature dims) is closed over so the layer loop unrolls at trace time.
    """
    log_norm_const = 0.5 * float(np.log(2.0 * np.pi))
    dequant_const = float(np.log(256.0)) * d

    def kernel(xe_ref, xo_ref, w_in_ref, b_in_ref, w_mid_ref, b_mid_ref,
               w_out_ref, b_out_ref, scale_ref, z_ref, ll_ref):
        xe = xe_ref[...]                       # x[:, ::2]   (B, half)
        xo = xo_ref[...]                       # x[:, 1::2]  (B, half)
        logdet = jnp.zeros((xe.shape[0], 1), jnp.float32)

        for i in range(n_layers):              # static unroll over couplings
            if mask_configs[i]:
                x1, x2 = xe, xo                # condition on even, move odd
            else:
                x1, x2 = xo, xe                # condition on odd, move even

            # in_net: Linear(half, mid) + ReLU
            h = jnp.dot(x1, w_in_ref[i], preferred_element_type=jnp.float32)
            h = jnp.maximum(h + b_in_ref[i], 0.0)
            # mid_net: (hidden - 1) x (Linear(mid, mid) + ReLU)
            for j in range(n_mid):
                k = i * n_mid + j
                h = jnp.dot(h, w_mid_ref[k], preferred_element_type=jnp.float32)
                h = jnp.maximum(h + b_mid_ref[k], 0.0)
            # out_net packed as [w_log_s | w_t] -> one matmul, contiguous split
            out = jnp.dot(h, w_out_ref[i], preferred_element_type=jnp.float32)
            out = out + b_out_ref[i]
            log_s = jnp.tanh(out[:, :half])
            t = out[:, half:]

            x2 = x2 * jnp.exp(log_s) + t
            logdet = logdet + jnp.sum(log_s, axis=1, keepdims=True)

            if mask_configs[i]:
                xo = x2
            else:
                xe = x2

        # Scaling layer (z = x * exp(scale)), scale packed as [even | odd].
        scale = scale_ref[...]                              # (1, D)
        ze = xe * jnp.exp(scale[:, :half])
        zo = xo * jnp.exp(scale[:, half:])
        z_ref[...] = jnp.concatenate([ze, zo], axis=1)      # packed [ze | zo]

        # Standard-normal prior log-prob + log-det terms, written once.
        logp = (jnp.sum(-0.5 * ze * ze - log_norm_const, axis=1, keepdims=True)
                + jnp.sum(-0.5 * zo * zo - log_norm_const, axis=1, keepdims=True))
        scale_sum = jnp.sum(scale, keepdims=True)           # (1, 1)
        total_logdet = logdet + (scale_sum + 1e-10) - dequant_const
        ll_ref[...] = logp + total_logdet

    return kernel


# ----------------------------------------------------------------------------
# One-time parameter packing (layout plumbing done outside the hot path)
# ----------------------------------------------------------------------------
def pack_params(params):
    layers = params["coupling"]
    mid = layers[0]["w_in"].shape[1]
    n_mid = layers[0]["w_mid"].shape[0]

    w_in = jnp.stack([l["w_in"] for l in layers])           # (L, half, mid)
    b_in = jnp.stack([l["b_in"] for l in layers])           # (L, 1, mid)
    if n_mid > 0:
        w_mid = jnp.concatenate([l["w_mid"] for l in layers], axis=0)  # (L*n_mid, mid, mid)
        b_mid = jnp.concatenate([l["b_mid"] for l in layers], axis=0)  # (L*n_mid, 1, mid)
    else:
        # dummy (never indexed) so the pallas_call has no zero-sized operand
        w_mid = jnp.zeros((1, mid, mid), jnp.float32)
        b_mid = jnp.zeros((1, 1, mid), jnp.float32)
    # out_net split: even output columns -> log_s, odd -> t, packed contiguously
    w_out = jnp.stack([jnp.concatenate([l["w_out"][:, ::2], l["w_out"][:, 1::2]],
                                       axis=1) for l in layers])       # (L, mid, D)
    b_out = jnp.stack([jnp.concatenate([l["b_out"][:, ::2], l["b_out"][:, 1::2]],
                                       axis=1) for l in layers])       # (L, 1, D)
    scale = params["scale"]
    scale_packed = jnp.concatenate([scale[:, ::2], scale[:, 1::2]], axis=1)

    return {
        "w_in": w_in, "b_in": b_in, "w_mid": w_mid, "b_mid": b_mid,
        "w_out": w_out, "b_out": b_out, "scale": scale_packed,
        "mask_configs": tuple(int(l["mask_config"]) for l in layers),
        "n_mid": int(n_mid),
    }


# ----------------------------------------------------------------------------
# Forward (log_prob) wrapper: one pallas_call for the whole flow
# ----------------------------------------------------------------------------
def nice_log_prob(x, packed, *, block_b=128):
    b, d = x.shape
    half = d // 2
    n_layers = packed["w_in"].shape[0]
    n_mid = packed["n_mid"]
    mask_configs = packed["mask_configs"]

    # De-interleave exactly once (interleave once at the end).
    xe = x[:, ::2]
    xo = x[:, 1::2]

    # Batch tiling: one tile for small batches, 128-row tiles otherwise.
    if b > block_b:
        tb = block_b
        bp = ((b + tb - 1) // tb) * tb
    else:
        tb = b
        bp = b
    if bp != b:
        pad = bp - b
        xe = jnp.pad(xe, ((0, pad), (0, 0)))
        xo = jnp.pad(xo, ((0, pad), (0, 0)))

    kernel = _make_fused_nice_kernel(n_layers, n_mid, mask_configs, half, d)

    zp, ll = pl.pallas_call(
        kernel,
        out_shape=(jax.ShapeDtypeStruct((bp, d), jnp.float32),
                   jax.ShapeDtypeStruct((bp, 1), jnp.float32)),
        grid_spec=pltpu.PrefetchScalarGridSpec(
            num_scalar_prefetch=0,
            grid=(bp // tb,),
            in_specs=[
                pl.BlockSpec((tb, half), lambda i: (i, 0)),          # xe
                pl.BlockSpec((tb, half), lambda i: (i, 0)),          # xo
                pl.BlockSpec(packed["w_in"].shape, lambda i: (0, 0, 0)),
                pl.BlockSpec(packed["b_in"].shape, lambda i: (0, 0, 0)),
                pl.BlockSpec(packed["w_mid"].shape, lambda i: (0, 0, 0)),
                pl.BlockSpec(packed["b_mid"].shape, lambda i: (0, 0, 0)),
                pl.BlockSpec(packed["w_out"].shape, lambda i: (0, 0, 0)),
                pl.BlockSpec(packed["b_out"].shape, lambda i: (0, 0, 0)),
                pl.BlockSpec(packed["scale"].shape, lambda i: (0, 0)),
            ],
            out_specs=(pl.BlockSpec((tb, d), lambda i: (i, 0)),       # z packed
                       pl.BlockSpec((tb, 1), lambda i: (i, 0))),      # log_ll
        ),
        compiler_params=pltpu.CompilerParams(
            dimension_semantics=("parallel",)),
    )(xe, xo, packed["w_in"], packed["b_in"], packed["w_mid"], packed["b_mid"],
      packed["w_out"], packed["b_out"], packed["scale"])

    # Single interleave back to original column order.
    ze, zo = zp[:b, :half], zp[:b, half:]
    z = jnp.stack([ze, zo], axis=-1).reshape(b, d)
    return ll[:b, 0], z


# ----------------------------------------------------------------------------
# Pure-JAX reference (mirrors the PyTorch module) for correctness checking
# ----------------------------------------------------------------------------
def _interleave(even_cols, odd_cols):
    b = even_cols.shape[0]
    return jnp.stack([even_cols, odd_cols], axis=-1).reshape(b, -1)


def nice_log_prob_ref(x, params):
    b, d = x.shape
    log_det_j = jnp.zeros((b,), jnp.float32)
    h = x
    for layer in params["coupling"]:
        if layer["mask_config"]:
            x1, x2 = h[:, ::2], h[:, 1::2]
        else:
            x2, x1 = h[:, ::2], h[:, 1::2]
        a = jnp.maximum(x1 @ layer["w_in"] + layer["b_in"], 0.0)
        for i in range(layer["w_mid"].shape[0]):
            a = jnp.maximum(a @ layer["w_mid"][i] + layer["b_mid"][i], 0.0)
        out_net = a @ layer["w_out"] + layer["b_out"]
        log_s = jnp.tanh(out_net[:, ::2])
        t = out_net[:, 1::2]
        x2 = x2 * jnp.exp(log_s) + t
        log_det_j = log_det_j + jnp.sum(log_s, axis=1)
        if layer["mask_config"]:
            h = _interleave(x1, x2)
        else:
            h = _interleave(x2, x1)
    z = h * jnp.exp(params["scale"])
    log_det_j = log_det_j + (jnp.sum(params["scale"]) + 1e-10)
    log_det_j = log_det_j - np.log(256.0) * d
    logp = jnp.sum(-0.5 * z * z - 0.5 * jnp.log(2.0 * jnp.pi), axis=1)
    return logp + log_det_j, z


# ----------------------------------------------------------------------------
# Deterministic parameter initialization (shapes per the PyTorch __init__)
# ----------------------------------------------------------------------------
def init_params(key, in_out_dim, mid_dim, hidden, coupling, mask_config):
    half = in_out_dim // 2
    layers = []
    for i in range(coupling):
        key, k0, k1, k2, k3, k4, k5 = jax.random.split(key, 7)
        layers.append({
            "mask_config": (mask_config + i) % 2,
            "w_in": (jax.random.normal(k0, (half, mid_dim)) * 0.2).astype(jnp.float32),
            "b_in": (jax.random.normal(k1, (1, mid_dim)) * 0.05).astype(jnp.float32),
            "w_mid": (jax.random.normal(k2, (hidden - 1, mid_dim, mid_dim)) * 0.2
                      ).astype(jnp.float32),
            "b_mid": (jax.random.normal(k3, (hidden - 1, 1, mid_dim)) * 0.05
                      ).astype(jnp.float32),
            "w_out": (jax.random.normal(k4, (mid_dim, in_out_dim)) * 0.2
                      ).astype(jnp.float32),
            "b_out": (jax.random.normal(k5, (1, in_out_dim)) * 0.05).astype(jnp.float32),
        })
    # Scaling layer parameter: zeros, exactly like nn.Parameter(torch.zeros((1, dim)))
    scale = jnp.zeros((1, in_out_dim), jnp.float32)
    return {"coupling": layers, "scale": scale}


# TODO(synk): only the 'adaptive' (affine) coupling + gaussian prior forward
# (log_prob) path is implemented; the logistic prior, additive coupling and
# sampling (f_inverse) variants are straightforward elementwise changes of the
# same fused kernel.

if __name__ == "__main__":
    B = 8            # batch
    IN_OUT_DIM = 64  # in_out_dim (must be even)
    MID_DIM = 64     # mid_dim
    HIDDEN = 3       # hidden -> mid_net has HIDDEN-1 = 2 layers
    COUPLING = 4     # number of coupling layers
    MASK_CONFIG = 1

    key = jax.random.PRNGKey(0)
    key, kp, kx = jax.random.split(key, 3)
    params = init_params(kp, IN_OUT_DIM, MID_DIM, HIDDEN, COUPLING, MASK_CONFIG)
    x = jax.random.normal(kx, (B, IN_OUT_DIM), dtype=jnp.float32)

    packed = pack_params(params)      # one-time layout plumbing
    log_ll, z = nice_log_prob(x, packed)
    log_ll = jax.block_until_ready(log_ll)
    z = jax.block_until_ready(z)

    log_ll_ref, z_ref = nice_log_prob_ref(x, params)
    np.testing.assert_allclose(np.asarray(log_ll), np.asarray(log_ll_ref),
                               rtol=1e-3, atol=1e-2)
    np.testing.assert_allclose(np.asarray(z), np.asarray(z_ref),
                               rtol=1e-3, atol=1e-3)

    print("KERNEL_OK")
</pallas_src>

<mosaic_0001>
module attributes {stable_mosaic.version = 11 : i64} {
  func.func @kernel(%arg0: i32, %arg1: memref<8x32xf32, #tpu.memory_space<vmem>>, %arg2: memref<8x32xf32, #tpu.memory_space<vmem>>, %arg3: memref<4x32x64xf32, #tpu.memory_space<vmem>>, %arg4: memref<4x1x64xf32, #tpu.memory_space<vmem>>, %arg5: memref<8x64x64xf32, #tpu.memory_space<vmem>>, %arg6: memref<8x1x64xf32, #tpu.memory_space<vmem>>, %arg7: memref<4x64x64xf32, #tpu.memory_space<vmem>>, %arg8: memref<4x1x64xf32, #tpu.memory_space<vmem>>, %arg9: memref<1x64xf32, #tpu.memory_space<vmem>>, %arg10: memref<8x64xf32, #tpu.memory_space<vmem>>, %arg11: memref<8x1xf32, #tpu.memory_space<vmem>>) attributes {dimension_semantics = [#tpu.dimension_semantics<parallel>], iteration_bounds = array<i64: 1>, scalar_prefetch = 0 : i64, scratch_operands = 0 : i64, tpu.core_type = #tpu.core_type<tc>, window_params = [{transform_indices = @transform_0, window_bounds = array<i64: 8, 32>}, {transform_indices = @transform_1, window_bounds = array<i64: 8, 32>}, {pipeline_mode = #tpu.pipeline_mode<synchronous>, transform_indices = @transform_2, window_bounds = array<i64: 4, 32, 64>}, {pipeline_mode = #tpu.pipeline_mode<synchronous>, transform_indices = @transform_3, window_bounds = array<i64: 4, 1, 64>}, {pipeline_mode = #tpu.pipeline_mode<synchronous>, transform_indices = @transform_4, window_bounds = array<i64: 8, 64, 64>}, {pipeline_mode = #tpu.pipeline_mode<synchronous>, transform_indices = @transform_5, window_bounds = array<i64: 8, 1, 64>}, {pipeline_mode = #tpu.pipeline_mode<synchronous>, transform_indices = @transform_6, window_bounds = array<i64: 4, 64, 64>}, {pipeline_mode = #tpu.pipeline_mode<synchronous>, transform_indices = @transform_7, window_bounds = array<i64: 4, 1, 64>}, {pipeline_mode = #tpu.pipeline_mode<synchronous>, transform_indices = @transform_8, window_bounds = array<i64: 1, 64>}, {transform_indices = @transform_9, window_bounds = array<i64: 8, 64>}, {transform_indices = @transform_10, window_bounds = array<i64: 8, 1>}]} {
    %c0 = arith.constant 0 : index
    %c0_0 = arith.constant 0 : index
    %0 = vector.load %arg1[%c0, %c0_0] : memref<8x32xf32, #tpu.memory_space<vmem>>, vector<8x32xf32>
    %c0_1 = arith.constant 0 : index
    %c0_2 = arith.constant 0 : index
    %1 = vector.load %arg2[%c0_1, %c0_2] : memref<8x32xf32, #tpu.memory_space<vmem>>, vector<8x32xf32>
    %cst = arith.constant 0.000000e+00 : f32
    %2 = vector.broadcast %cst : f32 to vector<8x1xf32>
    %c0_3 = arith.constant 0 : index
    %c0_4 = arith.constant 0 : index
    %c0_5 = arith.constant 0 : index
    %3 = vector.load %arg3[%c0_3, %c0_4, %c0_5] : memref<4x32x64xf32, #tpu.memory_space<vmem>>, vector<1x32x64xf32>
    %4 = vector.shape_cast %3 : vector<1x32x64xf32> to vector<32x64xf32>
    %cst_6 = arith.constant dense<0.000000e+00> : vector<8x64xf32>
    %5 = tpu.matmul %0, %4, %cst_6 {dimension_numbers = #tpu.dot_dimension_numbers<[1], [0], [0], [1], [0, 0, 1, 1], [], []>} : vector<8x32xf32>, vector<32x64xf32>, vector<8x64xf32> -> vector<8x64xf32>
    %c0_7 = arith.constant 0 : index
    %c0_8 = arith.constant 0 : index
    %c0_9 = arith.constant 0 : index
    %6 = vector.load %arg4[%c0_7, %c0_8, %c0_9] : memref<4x1x64xf32, #tpu.memory_space<vmem>>, vector<1x1x64xf32>
    %7 = vector.shape_cast %6 : vector<1x1x64xf32> to vector<1x64xf32>
    %8 = vector.broadcast %7 : vector<1x64xf32> to vector<8x64xf32>
    %9 = arith.addf %5, %8 : vector<8x64xf32>
    %cst_10 = arith.constant 0.000000e+00 : f32
    %10 = vector.broadcast %cst_10 : f32 to vector<8x64xf32>
    %11 = arith.maximumf %9, %10 : vector<8x64xf32>
    %c0_11 = arith.constant 0 : index
    %c0_12 = arith.constant 0 : index
    %c0_13 = arith.constant 0 : index
    %12 = vector.load %arg5[%c0_11, %c0_12, %c0_13] : memref<8x64x64xf32, #tpu.memory_space<vmem>>, vector<1x64x64xf32>
    %13 = vector.shape_cast %12 : vector<1x64x64xf32> to vector<64x64xf32>
    %cst_14 = arith.constant dense<0.000000e+00> : vector<8x64xf32>
    %14 = tpu.matmul %11, %13, %cst_14 {dimension_numbers = #tpu.dot_dimension_numbers<[1], [0], [0], [1], [0, 0, 1, 1], [], []>} : vector<8x64xf32>, vector<64x64xf32>, vector<8x64xf32> -> vector<8x64xf32>
    %c0_15 = arith.constant 0 : index
    %c0_16 = arith.constant 0 : index
    %c0_17 = arith.constant 0 : index
    %15 = vector.load %arg6[%c0_15, %c0_16, %c0_17] : memref<8x1x64xf32, #tpu.memory_space<vmem>>, vector<1x1x64xf32>
    %16 = vector.shape_cast %15 : vector<1x1x64xf32> to vector<1x64xf32>
    %17 = vector.broadcast %16 : vector<1x64xf32> to vector<8x64xf32>
    %18 = arith.addf %14, %17 : vector<8x64xf32>
    %cst_18 = arith.constant 0.000000e+00 : f32
    %19 = vector.broadcast %cst_18 : f32 to vector<8x64xf32>
    %20 = arith.maximumf %18, %19 : vector<8x64xf32>
    %c1 = arith.constant 1 : index
    %c0_19 = arith.constant 0 : index
    %c0_20 = arith.constant 0 : index
    %21 = vector.load %arg5[%c1, %c0_19, %c0_20] : memref<8x64x64xf32, #tpu.memory_space<vmem>>, vector<1x64x64xf32>
    %22 = vector.shape_cast %21 : vector<1x64x64xf32> to vector<64x64xf32>
    %cst_21 = arith.constant dense<0.000000e+00> : vector<8x64xf32>
    %23 = tpu.matmul %20, %22, %cst_21 {dimension_numbers = #tpu.dot_dimension_numbers<[1], [0], [0], [1], [0, 0, 1, 1], [], []>} : vector<8x64xf32>, vector<64x64xf32>, vector<8x64xf32> -> vector<8x64xf32>
    %c1_22 = arith.constant 1 : index
    %c0_23 = arith.constant 0 : index
    %c0_24 = arith.constant 0 : index
    %24 = vector.load %arg6[%c1_22, %c0_23, %c0_24] : memref<8x1x64xf32, #tpu.memory_space<vmem>>, vector<1x1x64xf32>
    %25 = vector.shape_cast %24 : vector<1x1x64xf32> to vector<1x64xf32>
    %26 = vector.broadcast %25 : vector<1x64xf32> to vector<8x64xf32>
    %27 = arith.addf %23, %26 : vector<8x64xf32>
    %cst_25 = arith.constant 0.000000e+00 : f32
    %28 = vector.broadcast %cst_25 : f32 to vector<8x64xf32>
    %29 = arith.maximumf %27, %28 : vector<8x64xf32>
    %c0_26 = arith.constant 0 : index
    %c0_27 = arith.constant 0 : index
    %c0_28 = arith.constant 0 : index
    %30 = vector.load %arg7[%c0_26, %c0_27, %c0_28] : memref<4x64x64xf32, #tpu.memory_space<vmem>>, vector<1x64x64xf32>
    %31 = vector.shape_cast %30 : vector<1x64x64xf32> to vector<64x64xf32>
    %cst_29 = arith.constant dense<0.000000e+00> : vector<8x64xf32>
    %32 = tpu.matmul %29, %31, %cst_29 {dimension_numbers = #tpu.dot_dimension_numbers<[1], [0], [0], [1], [0, 0, 1, 1], [], []>} : vector<8x64xf32>, vector<64x64xf32>, vector<8x64xf32> -> vector<8x64xf32>
    %c0_30 = arith.constant 0 : index
    %c0_31 = arith.constant 0 : index
    %c0_32 = arith.constant 0 : index
    %33 = vector.load %arg8[%c0_30, %c0_31, %c0_32] : memref<4x1x64xf32, #tpu.memory_space<vmem>>, vector<1x1x64xf32>
    %34 = vector.shape_cast %33 : vector<1x1x64xf32> to vector<1x64xf32>
    %35 = vector.broadcast %34 : vector<1x64xf32> to vector<8x64xf32>
    %36 = arith.addf %32, %35 : vector<8x64xf32>
    %37 = vector.extract_strided_slice %36 {offsets = [0, 0], sizes = [8, 32], strides = [1, 1]} : vector<8x64xf32> to vector<8x32xf32>
    %38 = math.tanh %37 : vector<8x32xf32>
    %39 = vector.extract_strided_slice %36 {offsets = [0, 32], sizes = [8, 32], strides = [1, 1]} : vector<8x64xf32> to vector<8x32xf32>
    %40 = math.exp %38 : vector<8x32xf32>
    %41 = arith.mulf %1, %40 : vector<8x32xf32>
    %42 = arith.addf %41, %39 : vector<8x32xf32>
    %cst_33 = arith.constant dense<0.000000e+00> : vector<8xf32>
    %43 = vector.multi_reduction <add>, %38, %cst_33 [1] : vector<8x32xf32> to vector<8xf32>
    %44 = vector.shape_cast %43 : vector<8xf32> to vector<8x1xf32>
    %45 = arith.addf %2, %44 : vector<8x1xf32>
    %c1_34 = arith.constant 1 : index
    %c0_35 = arith.constant 0 : index
    %c0_36 = arith.constant 0 : index
    %46 = vector.load %arg3[%c1_34, %c0_35, %c0_36] : memref<4x32x64xf32, #tpu.memory_space<vmem>>, vector<1x32x64xf32>
    %47 = vector.shape_cast %46 : vector<1x32x64xf32> to vector<32x64xf32>
    %cst_37 = arith.constant dense<0.000000e+00> : vector<8x64xf32>
    %48 = tpu.matmul %42, %47, %cst_37 {dimension_numbers = #tpu.dot_dimension_numbers<[1], [0], [0], [1], [0, 0, 1, 1], [], []>} : vector<8x32xf32>, vector<32x64xf32>, vector<8x64xf32> -> vector<8x64xf32>
    %c1_38 = arith.constant 1 : index
    %c0_39 = arith.constant 0 : index
    %c0_40 = arith.constant 0 : index
    %49 = vector.load %arg4[%c1_38, %c0_39, %c0_40] : memref<4x1x64xf32, #tpu.memory_space<vmem>>, vector<1x1x64xf32>
    %50 = vector.shape_cast %49 : vector<1x1x64xf32> to vector<1x64xf32>
    %51 = vector.broadcast %50 : vector<1x64xf32> to vector<8x64xf32>
    %52 = arith.addf %48, %51 : vector<8x64xf32>
    %cst_41 = arith.constant 0.000000e+00 : f32
    %53 = vector.broadcast %cst_41 : f32 to vector<8x64xf32>
    %54 = arith.maximumf %52, %53 : vector<8x64xf32>
    %c2 = arith.constant 2 : index
    %c0_42 = arith.constant 0 : index
    %c0_43 = arith.constant 0 : index
    %55 = vector.load %arg5[%c2, %c0_42, %c0_43] : memref<8x64x64xf32, #tpu.memory_space<vmem>>, vector<1x64x64xf32>
    %56 = vector.shape_cast %55 : vector<1x64x64xf32> to vector<64x64xf32>
    %cst_44 = arith.constant dense<0.000000e+00> : vector<8x64xf32>
    %57 = tpu.matmul %54, %56, %cst_44 {dimension_numbers = #tpu.dot_dimension_numbers<[1], [0], [0], [1], [0, 0, 1, 1], [], []>} : vector<8x64xf32>, vector<64x64xf32>, vector<8x64xf32> -> vector<8x64xf32>
    %c2_45 = arith.constant 2 : index
    %c0_46 = arith.constant 0 : index
    %c0_47 = arith.constant 0 : index
    %58 = vector.load %arg6[%c2_45, %c0_46, %c0_47] : memref<8x1x64xf32, #tpu.memory_space<vmem>>, vector<1x1x64xf32>
    %59 = vector.shape_cast %58 : vector<1x1x64xf32> to vector<1x64xf32>
    %60 = vector.broadcast %59 : vector<1x64xf32> to vector<8x64xf32>
    %61 = arith.addf %57, %60 : vector<8x64xf32>
    %cst_48 = arith.constant 0.000000e+00 : f32
    %62 = vector.broadcast %cst_48 : f32 to vector<8x64xf32>
    %63 = arith.maximumf %61, %62 : vector<8x64xf32>
    %c3 = arith.constant 3 : index
    %c0_49 = arith.constant 0 : index
    %c0_50 = arith.constant 0 : index
    %64 = vector.load %arg5[%c3, %c0_49, %c0_50] : memref<8x64x64xf32, #tpu.memory_space<vmem>>, vector<1x64x64xf32>
    %65 = vector.shape_cast %64 : vector<1x64x64xf32> to vector<64x64xf32>
    %cst_51 = arith.constant dense<0.000000e+00> : vector<8x64xf32>
    %66 = tpu.matmul %63, %65, %cst_51 {dimension_numbers = #tpu.dot_dimension_numbers<[1], [0], [0], [1], [0, 0, 1, 1], [], []>} : vector<8x64xf32>, vector<64x64xf32>, vector<8x64xf32> -> vector<8x64xf32>
    %c3_52 = arith.constant 3 : index
    %c0_53 = arith.constant 0 : index
    %c0_54 = arith.constant 0 : index
    %67 = vector.load %arg6[%c3_52, %c0_53, %c0_54] : memref<8x1x64xf32, #tpu.memory_space<vmem>>, vector<1x1x64xf32>
    %68 = vector.shape_cast %67 : vector<1x1x64xf32> to vector<1x64xf32>
    %69 = vector.broadcast %68 : vector<1x64xf32> to vector<8x64xf32>
    %70 = arith.addf %66, %69 : vector<8x64xf32>
    %cst_55 = arith.constant 0.000000e+00 : f32
    %71 = vector.broadcast %cst_55 : f32 to vector<8x64xf32>
    %72 = arith.maximumf %70, %71 : vector<8x64xf32>
    %c1_56 = arith.constant 1 : index
    %c0_57 = arith.constant 0 : index
    %c0_58 = arith.constant 0 : index
    %73 = vector.load %arg7[%c1_56, %c0_57, %c0_58] : memref<4x64x64xf32, #tpu.memory_space<vmem>>, vector<1x64x64xf32>
    %74 = vector.shape_cast %73 : vector<1x64x64xf32> to vector<64x64xf32>
    %cst_59 = arith.constant dense<0.000000e+00> : vector<8x64xf32>
    %75 = tpu.matmul %72, %74, %cst_59 {dimension_numbers = #tpu.dot_dimension_numbers<[1], [0], [0], [1], [0, 0, 1, 1], [], []>} : vector<8x64xf32>, vector<64x64xf32>, vector<8x64xf32> -> vector<8x64xf32>
    %c1_60 = arith.constant 1 : index
    %c0_61 = arith.constant 0 : index
    %c0_62 = arith.constant 0 : index
    %76 = vector.load %arg8[%c1_60, %c0_61, %c0_62] : memref<4x1x64xf32, #tpu.memory_space<vmem>>, vector<1x1x64xf32>
    %77 = vector.shape_cast %76 : vector<1x1x64xf32> to vector<1x64xf32>
    %78 = vector.broadcast %77 : vector<1x64xf32> to vector<8x64xf32>
    %79 = arith.addf %75, %78 : vector<8x64xf32>
    %80 = vector.extract_strided_slice %79 {offsets = [0, 0], sizes = [8, 32], strides = [1, 1]} : vector<8x64xf32> to vector<8x32xf32>
    %81 = math.tanh %80 : vector<8x32xf32>
    %82 = vector.extract_strided_slice %79 {offsets = [0, 32], sizes = [8, 32], strides = [1, 1]} : vector<8x64xf32> to vector<8x32xf32>
    %83 = math.exp %81 : vector<8x32xf32>
    %84 = arith.mulf %0, %83 : vector<8x32xf32>
    %85 = arith.addf %84, %82 : vector<8x32xf32>
    %cst_63 = arith.constant dense<0.000000e+00> : vector<8xf32>
    %86 = vector.multi_reduction <add>, %81, %cst_63 [1] : vector<8x32xf32> to vector<8xf32>
    %87 = vector.shape_cast %86 : vector<8xf32> to vector<8x1xf32>
    %88 = arith.addf %45, %87 : vector<8x1xf32>
    %c2_64 = arith.constant 2 : index
    %c0_65 = arith.constant 0 : index
    %c0_66 = arith.constant 0 : index
    %89 = vector.load %arg3[%c2_64, %c0_65, %c0_66] : memref<4x32x64xf32, #tpu.memory_space<vmem>>, vector<1x32x64xf32>
    %90 = vector.shape_cast %89 : vector<1x32x64xf32> to vector<32x64xf32>
    %cst_67 = arith.constant dense<0.000000e+00> : vector<8x64xf32>
    %91 = tpu.matmul %85, %90, %cst_67 {dimension_numbers = #tpu.dot_dimension_numbers<[1], [0], [0], [1], [0, 0, 1, 1], [], []>} : vector<8x32xf32>, vector<32x64xf32>, vector<8x64xf32> -> vector<8x64xf32>
    %c2_68 = arith.constant 2 : index
    %c0_69 = arith.constant 0 : index
    %c0_70 = arith.constant 0 : index
    %92 = vector.load %arg4[%c2_68, %c0_69, %c0_70] : memref<4x1x64xf32, #tpu.memory_space<vmem>>, vector<1x1x64xf32>
    %93 = vector.shape_cast %92 : vector<1x1x64xf32> to vector<1x64xf32>
    %94 = vector.broadcast %93 : vector<1x64xf32> to vector<8x64xf32>
    %95 = arith.addf %91, %94 : vector<8x64xf32>
    %cst_71 = arith.constant 0.000000e+00 : f32
    %96 = vector.broadcast %cst_71 : f32 to vector<8x64xf32>
    %97 = arith.maximumf %95, %96 : vector<8x64xf32>
    %c4 = arith.constant 4 : index
    %c0_72 = arith.constant 0 : index
    %c0_73 = arith.constant 0 : index
    %98 = vector.load %arg5[%c4, %c0_72, %c0_73] : memref<8x64x64xf32, #tpu.memory_space<vmem>>, vector<1x64x64xf32>
    %99 = vector.shape_cast %98 : vector<1x64x64xf32> to vector<64x64xf32>
    %cst_74 = arith.constant dense<0.000000e+00> : vector<8x64xf32>
    %100 = tpu.matmul %97, %99, %cst_74 {dimension_numbers = #tpu.dot_dimension_numbers<[1], [0], [0], [1], [0, 0, 1, 1], [], []>} : vector<8x64xf32>, vector<64x64xf32>, vector<8x64xf32> -> vector<8x64xf32>
    %c4_75 = arith.constant 4 : index
    %c0_76 = arith.constant 0 : index
    %c0_77 = arith.constant 0 : index
    %101 = vector.load %arg6[%c4_75, %c0_76, %c0_77] : memref<8x1x64xf32, #tpu.memory_space<vmem>>, vector<1x1x64xf32>
    %102 = vector.shape_cast %101 : vector<1x1x64xf32> to vector<1x64xf32>
    %103 = vector.broadcast %102 : vector<1x64xf32> to vector<8x64xf32>
    %104 = arith.addf %100, %103 : vector<8x64xf32>
    %cst_78 = arith.constant 0.000000e+00 : f32
    %105 = vector.broadcast %cst_78 : f32 to vector<8x64xf32>
    %106 = arith.maximumf %104, %105 : vector<8x64xf32>
    %c5 = arith.constant 5 : index
    %c0_79 = arith.constant 0 : index
    %c0_80 = arith.constant 0 : index
    %107 = vector.load %arg5[%c5, %c0_79, %c0_80] : memref<8x64x64xf32, #tpu.memory_space<vmem>>, vector<1x64x64xf32>
    %108 = vector.shape_cast %107 : vector<1x64x64xf32> to vector<64x64xf32>
    %cst_81 = arith.constant dense<0.000000e+00> : vector<8x64xf32>
    %109 = tpu.matmul %106, %108, %cst_81 {dimension_numbers = #tpu.dot_dimension_numbers<[1], [0], [0], [1], [0, 0, 1, 1], [], []>} : vector<8x64xf32>, vector<64x64xf32>, vector<8x64xf32> -> vector<8x64xf32>
    %c5_82 = arith.constant 5 : index
    %c0_83 = arith.constant 0 : index
    %c0_84 = arith.constant 0 : index
    %110 = vector.load %arg6[%c5_82, %c0_83, %c0_84] : memref<8x1x64xf32, #tpu.memory_space<vmem>>, vector<1x1x64xf32>
    %111 = vector.shape_cast %110 : vector<1x1x64xf32> to vector<1x64xf32>
    %112 = vector.broadcast %111 : vector<1x64xf32> to vector<8x64xf32>
    %113 = arith.addf %109, %112 : vector<8x64xf32>
    %cst_85 = arith.constant 0.000000e+00 : f32
    %114 = vector.broadcast %cst_85 : f32 to vector<8x64xf32>
    %115 = arith.maximumf %113, %114 : vector<8x64xf32>
    %c2_86 = arith.constant 2 : index
    %c0_87 = arith.constant 0 : index
    %c0_88 = arith.constant 0 : index
    %116 = vector.load %arg7[%c2_86, %c0_87, %c0_88] : memref<4x64x64xf32, #tpu.memory_space<vmem>>, vector<1x64x64xf32>
    %117 = vector.shape_cast %116 : vector<1x64x64xf32> to vector<64x64xf32>
    %cst_89 = arith.constant dense<0.000000e+00> : vector<8x64xf32>
    %118 = tpu.matmul %115, %117, %cst_89 {dimension_numbers = #tpu.dot_dimension_numbers<[1], [0], [0], [1], [0, 0, 1, 1], [], []>} : vector<8x64xf32>, vector<64x64xf32>, vector<8x64xf32> -> vector<8x64xf32>
    %c2_90 = arith.constant 2 : index
    %c0_91 = arith.constant 0 : index
    %c0_92 = arith.constant 0 : index
    %119 = vector.load %arg8[%c2_90, %c0_91, %c0_92] : memref<4x1x64xf32, #tpu.memory_space<vmem>>, vector<1x1x64xf32>
    %120 = vector.shape_cast %119 : vector<1x1x64xf32> to vector<1x64xf32>
    %121 = vector.broadcast %120 : vector<1x64xf32> to vector<8x64xf32>
    %122 = arith.addf %118, %121 : vector<8x64xf32>
    %123 = vector.extract_strided_slice %122 {offsets = [0, 0], sizes = [8, 32], strides = [1, 1]} : vector<8x64xf32> to vector<8x32xf32>
    %124 = math.tanh %123 : vector<8x32xf32>
    %125 = vector.extract_strided_slice %122 {offsets = [0, 32], sizes = [8, 32], strides = [1, 1]} : vector<8x64xf32> to vector<8x32xf32>
    %126 = math.exp %124 : vector<8x32xf32>
    %127 = arith.mulf %42, %126 : vector<8x32xf32>
    %128 = arith.addf %127, %125 : vector<8x32xf32>
    %cst_93 = arith.constant dense<0.000000e+00> : vector<8xf32>
    %129 = vector.multi_reduction <add>, %124, %cst_93 [1] : vector<8x32xf32> to vector<8xf32>
    %130 = vector.shape_cast %129 : vector<8xf32> to vector<8x1xf32>
    %131 = arith.addf %88, %130 : vector<8x1xf32>
    %c3_94 = arith.constant 3 : index
    %c0_95 = arith.constant 0 : index
    %c0_96 = arith.constant 0 : index
    %132 = vector.load %arg3[%c3_94, %c0_95, %c0_96] : memref<4x32x64xf32, #tpu.memory_space<vmem>>, vector<1x32x64xf32>
    %133 = vector.shape_cast %132 : vector<1x32x64xf32> to vector<32x64xf32>
    %cst_97 = arith.constant dense<0.000000e+00> : vector<8x64xf32>
    %134 = tpu.matmul %128, %133, %cst_97 {dimension_numbers = #tpu.dot_dimension_numbers<[1], [0], [0], [1], [0, 0, 1, 1], [], []>} : vector<8x32xf32>, vector<32x64xf32>, vector<8x64xf32> -> vector<8x64xf32>
    %c3_98 = arith.constant 3 : index
    %c0_99 = arith.constant 0 : index
    %c0_100 = arith.constant 0 : index
    %135 = vector.load %arg4[%c3_98, %c0_99, %c0_100] : memref<4x1x64xf32, #tpu.memory_space<vmem>>, vector<1x1x64xf32>
    %136 = vector.shape_cast %135 : vector<1x1x64xf32> to vector<1x64xf32>
    %137 = vector.broadcast %136 : vector<1x64xf32> to vector<8x64xf32>
    %138 = arith.addf %134, %137 : vector<8x64xf32>
    %cst_101 = arith.constant 0.000000e+00 : f32
    %139 = vector.broadcast %cst_101 : f32 to vector<8x64xf32>
    %140 = arith.maximumf %138, %139 : vector<8x64xf32>
    %c6 = arith.constant 6 : index
    %c0_102 = arith.constant 0 : index
    %c0_103 = arith.constant 0 : index
    %141 = vector.load %arg5[%c6, %c0_102, %c0_103] : memref<8x64x64xf32, #tpu.memory_space<vmem>>, vector<1x64x64xf32>
    %142 = vector.shape_cast %141 : vector<1x64x64xf32> to vector<64x64xf32>
    %cst_104 = arith.constant dense<0.000000e+00> : vector<8x64xf32>
    %143 = tpu.matmul %140, %142, %cst_104 {dimension_numbers = #tpu.dot_dimension_numbers<[1], [0], [0], [1], [0, 0, 1, 1], [], []>} : vector<8x64xf32>, vector<64x64xf32>, vector<8x64xf32> -> vector<8x64xf32>
    %c6_105 = arith.constant 6 : index
    %c0_106 = arith.constant 0 : index
    %c0_107 = arith.constant 0 : index
    %144 = vector.load %arg6[%c6_105, %c0_106, %c0_107] : memref<8x1x64xf32, #tpu.memory_space<vmem>>, vector<1x1x64xf32>
    %145 = vector.shape_cast %144 : vector<1x1x64xf32> to vector<1x64xf32>
    %146 = vector.broadcast %145 : vector<1x64xf32> to vector<8x64xf32>
    %147 = arith.addf %143, %146 : vector<8x64xf32>
    %cst_108 = arith.constant 0.000000e+00 : f32
    %148 = vector.broadcast %cst_108 : f32 to vector<8x64xf32>
    %149 = arith.maximumf %147, %148 : vector<8x64xf32>
    %c7 = arith.constant 7 : index
    %c0_109 = arith.constant 0 : index
    %c0_110 = arith.constant 0 : index
    %150 = vector.load %arg5[%c7, %c0_109, %c0_110] : memref<8x64x64xf32, #tpu.memory_space<vmem>>, vector<1x64x64xf32>
    %151 = vector.shape_cast %150 : vector<1x64x64xf32> to vector<64x64xf32>
    %cst_111 = arith.constant dense<0.000000e+00> : vector<8x64xf32>
    %152 = tpu.matmul %149, %151, %cst_111 {dimension_numbers = #tpu.dot_dimension_numbers<[1], [0], [0], [1], [0, 0, 1, 1], [], []>} : vector<8x64xf32>, vector<64x64xf32>, vector<8x64xf32> -> vector<8x64xf32>
    %c7_112 = arith.constant 7 : index
    %c0_113 = arith.constant 0 : index
    %c0_114 = arith.constant 0 : index
    %153 = vector.load %arg6[%c7_112, %c0_113, %c0_114] : memref<8x1x64xf32, #tpu.memory_space<vmem>>, vector<1x1x64xf32>
    %154 = vector.shape_cast %153 : vector<1x1x64xf32> to vector<1x64xf32>
    %155 = vector.broadcast %154 : vector<1x64xf32> to vector<8x64xf32>
    %156 = arith.addf %152, %155 : vector<8x64xf32>
    %cst_115 = arith.constant 0.000000e+00 : f32
    %157 = vector.broadcast %cst_115 : f32 to vector<8x64xf32>
    %158 = arith.maximumf %156, %157 : vector<8x64xf32>
    %c3_116 = arith.constant 3 : index
    %c0_117 = arith.constant 0 : index
    %c0_118 = arith.constant 0 : index
    %159 = vector.load %arg7[%c3_116, %c0_117, %c0_118] : memref<4x64x64xf32, #tpu.memory_space<vmem>>, vector<1x64x64xf32>
    %160 = vector.shape_cast %159 : vector<1x64x64xf32> to vector<64x64xf32>
    %cst_119 = arith.constant dense<0.000000e+00> : vector<8x64xf32>
    %161 = tpu.matmul %158, %160, %cst_119 {dimension_numbers = #tpu.dot_dimension_numbers<[1], [0], [0], [1], [0, 0, 1, 1], [], []>} : vector<8x64xf32>, vector<64x64xf32>, vector<8x64xf32> -> vector<8x64xf32>
    %c3_120 = arith.constant 3 : index
    %c0_121 = arith.constant 0 : index
    %c0_122 = arith.constant 0 : index
    %162 = vector.load %arg8[%c3_120, %c0_121, %c0_122] : memref<4x1x64xf32, #tpu.memory_space<vmem>>, vector<1x1x64xf32>
    %163 = vector.shape_cast %162 : vector<1x1x64xf32> to vector<1x64xf32>
    %164 = vector.broadcast %163 : vector<1x64xf32> to vector<8x64xf32>
    %165 = arith.addf %161, %164 : vector<8x64xf32>
    %166 = vector.extract_strided_slice %165 {offsets = [0, 0], sizes = [8, 32], strides = [1, 1]} : vector<8x64xf32> to vector<8x32xf32>
    %167 = math.tanh %166 : vector<8x32xf32>
    %168 = vector.extract_strided_slice %165 {offsets = [0, 32], sizes = [8, 32], strides = [1, 1]} : vector<8x64xf32> to vector<8x32xf32>
    %169 = math.exp %167 : vector<8x32xf32>
    %170 = arith.mulf %85, %169 : vector<8x32xf32>
    %171 = arith.addf %170, %168 : vector<8x32xf32>
    %cst_123 = arith.constant dense<0.000000e+00> : vector<8xf32>
    %172 = vector.multi_reduction <add>, %167, %cst_123 [1] : vector<8x32xf32> to vector<8xf32>
    %173 = vector.shape_cast %172 : vector<8xf32> to vector<8x1xf32>
    %174 = arith.addf %131, %173 : vector<8x1xf32>
    %c0_124 = arith.constant 0 : index
    %c0_125 = arith.constant 0 : index
    %175 = vector.load %arg9[%c0_124, %c0_125] : memref<1x64xf32, #tpu.memory_space<vmem>>, vector<1x64xf32>
    %176 = vector.extract_strided_slice %175 {offsets = [0, 0], sizes = [1, 32], strides = [1, 1]} : vector<1x64xf32> to vector<1x32xf32>
    %177 = math.exp %176 : vector<1x32xf32>
    %178 = vector.broadcast %177 : vector<1x32xf32> to vector<8x32xf32>
    %179 = arith.mulf %171, %178 : vector<8x32xf32>
    %180 = vector.extract_strided_slice %175 {offsets = [0, 32], sizes = [1, 32], strides = [1, 1]} : vector<1x64xf32> to vector<1x32xf32>
    %181 = math.exp %180 : vector<1x32xf32>
    %182 = vector.broadcast %181 : vector<1x32xf32> to vector<8x32xf32>
    %183 = arith.mulf %128, %182 : vector<8x32xf32>
    %184 = tpu.concatenate %179, %183 in 1 : vector<8x32xf32>, vector<8x32xf32> -> vector<8x64xf32>
    %c0_126 = arith.constant 0 : index
    %c0_127 = arith.constant 0 : index
    %185 = vector.load %arg10[%c0_126, %c0_127] : memref<8x64xf32, #tpu.memory_space<vmem>>, vector<8x64xf32>
    tpu.vector_store %arg10[%c0_126, %c0_127], %184 {strides = array<i32>} : memref<8x64xf32, #tpu.memory_space<vmem>>, vector<8x64xf32>,
    %cst_128 = arith.constant -5.000000e-01 : f32
    %186 = vector.broadcast %cst_128 : f32 to vector<8x32xf32>
    %187 = arith.mulf %186, %179 : vector<8x32xf32>
    %188 = arith.mulf %187, %179 : vector<8x32xf32>
    %cst_129 = arith.constant 0.918938517 : f32
    %189 = vector.broadcast %cst_129 : f32 to vector<8x32xf32>
    %190 = arith.subf %188, %189 : vector<8x32xf32>
    %cst_130 = arith.constant dense<0.000000e+00> : vector<8xf32>
    %191 = vector.multi_reduction <add>, %190, %cst_130 [1] : vector<8x32xf32> to vector<8xf32>
    %192 = vector.shape_cast %191 : vector<8xf32> to vector<8x1xf32>
    %cst_131 = arith.constant -5.000000e-01 : f32
    %193 = vector.broadcast %cst_131 : f32 to vector<8x32xf32>
    %194 = arith.mulf %193, %183 : vector<8x32xf32>
    %195 = arith.mulf %194, %183 : vector<8x32xf32>
    %cst_132 = arith.constant 0.918938517 : f32
    %196 = vector.broadcast %cst_132 : f32 to vector<8x32xf32>
    %197 = arith.subf %195, %196 : vector<8x32xf32>
    %cst_133 = arith.constant dense<0.000000e+00> : vector<8xf32>
    %198 = vector.multi_reduction <add>, %197, %cst_133 [1] : vector<8x32xf32> to vector<8xf32>
    %199 = vector.shape_cast %198 : vector<8xf32> to vector<8x1xf32>
    %200 = arith.addf %192, %199 : vector<8x1xf32>
    %201 = vector.shape_cast %175 : vector<1x64xf32> to vector<1x1x64xf32>
    %cst_134 = arith.constant dense<0.000000e+00> : vector<1xf32>
    %202 = vector.multi_reduction <add>, %201, %cst_134 [1, 2] : vector<1x1x64xf32> to vector<1xf32>
    %203 = vector.shape_cast %202 : vector<1xf32> to vector<1x1x1xf32>
    %204 = vector.extract %203[0, 0, 0] : f32 from vector<1x1x1xf32>
    %205 = vector.broadcast %204 : f32 to vector<1x1xf32>
    %cst_135 = arith.constant 1.000000e-10 : f32
    %206 = vector.broadcast %cst_135 : f32 to vector<1x1xf32>
    %207 = arith.addf %205, %206 : vector<1x1xf32>
    %208 = vector.broadcast %207 : vector<1x1xf32> to vector<8x1xf32>
    %209 = arith.addf %174, %208 : vector<8x1xf32>
    %cst_136 = arith.constant 354.891357 : f32
    %210 = vector.broadcast %cst_136 : f32 to vector<8x1xf32>
    %211 = arith.subf %209, %210 : vector<8x1xf32>
    %212 = arith.addf %200, %211 : vector<8x1xf32>
    %c0_137 = arith.constant 0 : index
    %c0_138 = arith.constant 0 : index
    %213 = vector.load %arg11[%c0_137, %c0_138] : memref<8x1xf32, #tpu.memory_space<vmem>>, vector<8x1xf32>
    tpu.vector_store %arg11[%c0_137, %c0_138], %212 {strides = array<i32>} : memref<8x1xf32, #tpu.memory_space<vmem>>, vector<8x1xf32>,
    return
  }
  func.func @transform_0(%arg0: i32) -> (i32, i32) {
    %c0_i32 = arith.constant 0 : i32
    %c0_i32_0 = arith.constant 0 : i32
    return %arg0, %c0_i32 : i32, i32
  }
  func.func @transform_1(%arg0: i32) -> (i32, i32) {
    %c0_i32 = arith.constant 0 : i32
    %c0_i32_0 = arith.constant 0 : i32
    return %arg0, %c0_i32 : i32, i32
  }
  func.func @transform_2(%arg0: i32) -> (i32, i32, i32) {
    %c0_i32 = arith.constant 0 : i32
    %c0_i32_0 = arith.constant 0 : i32
    %c0_i32_1 = arith.constant 0 : i32
    %c0_i32_2 = arith.constant 0 : i32
    return %c0_i32, %c0_i32_0, %c0_i32_1 : i32, i32, i32
  }
  func.func @transform_3(%arg0: i32) -> (i32, i32, i32) {
    %c0_i32 = arith.constant 0 : i32
    %c0_i32_0 = arith.constant 0 : i32
    %c0_i32_1 = arith.constant 0 : i32
    %c0_i32_2 = arith.constant 0 : i32
    return %c0_i32, %c0_i32_0, %c0_i32_1 : i32, i32, i32
  }
  func.func @transform_4(%arg0: i32) -> (i32, i32, i32) {
    %c0_i32 = arith.constant 0 : i32
    %c0_i32_0 = arith.constant 0 : i32
    %c0_i32_1 = arith.constant 0 : i32
    %c0_i32_2 = arith.constant 0 : i32
    return %c0_i32, %c0_i32_0, %c0_i32_1 : i32, i32, i32
  }
  func.func @transform_5(%arg0: i32) -> (i32, i32, i32) {
    %c0_i32 = arith.constant 0 : i32
    %c0_i32_0 = arith.constant 0 : i32
    %c0_i32_1 = arith.constant 0 : i32
    %c0_i32_2 = arith.constant 0 : i32
    return %c0_i32, %c0_i32_0, %c0_i32_1 : i32, i32, i32
  }
  func.func @transform_6(%arg0: i32) -> (i32, i32, i32) {
    %c0_i32 = arith.constant 0 : i32
    %c0_i32_0 = arith.constant 0 : i32
    %c0_i32_1 = arith.constant 0 : i32
    %c0_i32_2 = arith.constant 0 : i32
    return %c0_i32, %c0_i32_0, %c0_i32_1 : i32, i32, i32
  }
  func.func @transform_7(%arg0: i32) -> (i32, i32, i32) {
    %c0_i32 = arith.constant 0 : i32
    %c0_i32_0 = arith.constant 0 : i32
    %c0_i32_1 = arith.constant 0 : i32
    %c0_i32_2 = arith.constant 0 : i32
    return %c0_i32, %c0_i32_0, %c0_i32_1 : i32, i32, i32
  }
  func.func @transform_8(%arg0: i32) -> (i32, i32) {
    %c0_i32 = arith.constant 0 : i32
    %c0_i32_0 = arith.constant 0 : i32
    %c0_i32_1 = arith.constant 0 : i32
    return %c0_i32, %c0_i32_0 : i32, i32
  }
  func.func @transform_9(%arg0: i32) -> (i32, i32) {
    %c0_i32 = arith.constant 0 : i32
    %c0_i32_0 = arith.constant 0 : i32
    return %arg0, %c0_i32 : i32, i32
  }
  func.func @transform_10(%arg0: i32) -> (i32, i32) {
    %c0_i32 = arith.constant 0 : i32
    %c0_i32_0 = arith.constant 0 : i32
    return %arg0, %c0_i32 : i32, i32
  }
}

</mosaic_0001>

<bundles_post_ra>
// kernel: tpu_custom_call.1
= control target key start
LH: loop header
LB: loop body
LE: loop exit
PB: predicated region body
PF: predicated region fallthrough
CT: control target
= control target key end

     0   :  { %16 = vsyncpa [#allocation3], 0  ;;  %s1292_s0 = inlined_call_operand.hbm [shape: f32[8,32], index: 0, kind: input, shape index: {}]   ;;  %s1293_s1 = inlined_call_operand.hbm [shape: f32[8,32], index: 1, kind: input, shape index: {}]   ;;  %s1294_s2 = inlined_call_operand.hbm [shape: f32[4,32,64], index: 2, kind: input, shape index: {}]   ;;  %s1295_s3 = inlined_call_operand.hbm [shape: f32[4,1,64], index: 3, kind: input, shape index: {}]   ;;  %s1296_s4 = inlined_call_operand.hbm [shape: f32[8,64,64], index: 4, kind: input, shape index: {}]   ;;  %s1297_s5 = inlined_call_operand.hbm [shape: f32[8,1,64], index: 5, kind: input, shape index: {}]   ;;  %s1298_s6 = inlined_call_operand.hbm [shape: f32[4,64,64], index: 6, kind: input, shape index: {}]   ;;  %s1299_s7 = inlined_call_operand.vmem [shape: f32[4,1,64], index: 7, kind: input, shape index: {}]   ;;  %s1300_s8 = inlined_call_operand.vmem [shape: f32[1,64], index: 8, kind: input, shape index: {}]   ;;  %s1301_s9 = inlined_call_operand.hbm [shape: f32[8,64], index: 9, kind: output, shape index: {0}]   ;;  %s1302_s10 = inlined_call_operand.vmem [shape: f32[8,1], index: 10, kind: output, shape index: {1}]  }
   0x1   :  { %17 = vsyncpa [#allocation6], 0 }
   0x2   :  { %18 = vsyncpa [#allocation9], 0 }
   0x3   :  { %19 = vsyncpa [#allocation12], 0  ;;  %s37_s15 = sshll.u32 %s1293_s1, 4  ;;  %s38_s15 = int_to_ptr.hbm [resolvable:$true] %s37_s15 }
   0x4   :  { %20 = vsyncpa [#allocation4], 0  ;;  %s1124_s16 = smov [#allocation5]   ;;  %s60_s20 = sshll.u32 %s1295_s3, 4  ;;  %s61_s20 = int_to_ptr.hbm [resolvable:$true] %s60_s20 }
   0x5   :  { %s39_s17 = sshll.u32 %s1124_s16, 4  ;;  %s1125_s21 = smov [#allocation8]   ;;  %s40_s17 = int_to_ptr.vmem [resolvable:$true] %s39_s17 }
   0x6   :  { %42 = dma.hbm_to_vmem [thread:$0]  %s38_s15, 128, %s40_s17, [#allocation6]  }
   0x7   :  { %s62_s22 = sshll.u32 %s1125_s21, 4  ;;  %s1126_s23 = smov 16   ;;  %s63_s22 = int_to_ptr.vmem [resolvable:$true] %s62_s22 }
   0x8   :  { %s1127_s24 = smov 1   ;;  %s86_s1 = sshll.u32 %s1297_s5, 4  ;;  %s87_s1 = int_to_ptr.hbm [resolvable:$true] %s86_s1 }
   0x9   :  { %68 = dma.hbm_to_vmem [thread:$0]  %s61_s20, 64, %s63_s22, [#allocation9], %s1126_s23, %s1126_s23, %s1127_s24  }
   0xa   :  { %s1128_s27 = smov [#allocation11]   ;;  %s26_s3 = sshll.u32 %s1292_s0, 4  ;;  %s27_s3 = int_to_ptr.hbm [resolvable:$true] %s26_s3 }
   0xb   :  { %s88_s28 = sshll.u32 %s1128_s27, 4  ;;  %s1129_s11 = smov [#allocation2]   ;;  %s89_s28 = int_to_ptr.vmem [resolvable:$true] %s88_s28 }
   0xc   :  { %94 = dma.hbm_to_vmem [thread:$0]  %s87_s1, 128, %s89_s28, [#allocation12], %s1126_s23, %s1126_s23, %s1127_s24  }
   0xd   :  { %s28_s12 = sshll.u32 %s1129_s11, 4  ;;  %s47_s15 = sshll.u32 %s1294_s2, 4  ;;  %s29_s12 = int_to_ptr.vmem [resolvable:$true] %s28_s12  ;;  %s48_s15 = int_to_ptr.hbm [resolvable:$true] %s47_s15 }
   0xe   :  { %31 = dma.hbm_to_vmem [thread:$0]  %s27_s3, 128, %s29_s12, [#allocation3]  }
   0xf   :  { %s1130_s5 = smov [#allocation7]   ;;  %s73_s19 = sshll.u32 %s1296_s4, 4  ;;  %s74_s19 = int_to_ptr.hbm [resolvable:$true] %s73_s19 }
  0x10   :  { %s49_s16 = sshll.u32 %s1130_s5, 4  ;;  %s1131_s20 = smov 128   ;;  %s50_s16 = int_to_ptr.vmem [resolvable:$true] %s49_s16 }
  0x11   :  { %s1132_s0 = smov 8   ;;  %s1133_s21 = smov [#allocation10]  }
  0x12   :  { %55 = dma.hbm_to_vmem [thread:$0]  %s48_s15, 2048, %s50_s16, [#allocation6], %s1131_s20, %s1131_s20, %s1132_s0  }
  0x13   :  { %s75_s22 = sshll.u32 %s1133_s21, 4  ;;  %s99_s2 = sshll.u32 %s1298_s6, 4  ;;  %s76_s22 = int_to_ptr.vmem [resolvable:$true] %s75_s22  ;;  %s100_s2 = int_to_ptr.hbm [resolvable:$true] %s99_s2 }
  0x14   :  { %81 = dma.hbm_to_vmem [thread:$0]  %s74_s19, 8192, %s76_s22, [#allocation9], %s1131_s20, %s1131_s20, %s1132_s0  }
  0x15   :  { %s1134_s25 = smov [#allocation13]  }
  0x16   :  { %s101_s26 = sshll.u32 %s1134_s25, 4  ;;  %s102_s26 = int_to_ptr.vmem [resolvable:$true] %s101_s26 }
  0x17   :  { %107 = dma.hbm_to_vmem [thread:$0]  %s100_s2, 4096, %s102_s26, [#allocation12], %s1131_s20, %s1131_s20, %s1132_s0  }
  0x18   :  { %1114 = dma.done.wait [#allocation3], 128  }
  0x19   :  { %1115 = vsyncadd [#allocation3], 4294967168 }
  0x1a   :  { %1116 = dma.done.wait [#allocation6], 2176  }
  0x1b   :  { %1117 = vsyncadd [#allocation6], 4294965120 }
  0x1c   :  { %1118 = dma.done.wait [#allocation9], 8256  }
  0x1d   :  { %1119 = vsyncadd [#allocation9], 4294959040 }
  0x1e   :  { %1120 = dma.done.wait [#allocation12], 4224  }
  0x1f   :  { %1121 = vsyncadd [#allocation12], 4294963072  ;;  %v145_v0 = vld [vmem:[#allocation7 + $0x18] sm:$0xff]  ;;  %v144_v1 = vld [vmem:[#allocation7 + $0x10] sm:$0xff]  ;;  %vm150_vm0 = vcmask 261120   ;;  %vm187_vm1 = vcmask 523264  }
  0x20   :  { %166 = vmatpush.msra.mxu1 %v145_v0  ;;  %v143_v2 = vld [vmem:[#allocation7 + $0x8] sm:$0xff]  ;;  %v142_v3 = vld [vmem:[#allocation7] sm:$0xff]  ;;  %v1214_v4 = vld [vmem:[#allocation2] sm:$0xff]  ;;  %s1135_s1 = smov 96   ;;  %vm808_vm2 = vcmask 516096   ;;  %s1137_s14 = smov [#allocation14]  }
  0x21   :  { %v182_v5 = vld [vmem:[#allocation10 + $0x38] sm:$0xff]  ;;  %v181_v6 = vld [vmem:[#allocation10 + $0x30] sm:$0xff]  ;;  %v180_v7 = vld [vmem:[#allocation10 + $0x28] sm:$0xff]  ;;  %s831_s15 = sshll.u32 %s1137_s14, 4  ;;  %s833_s17 = sshll.u32 %s1301_s9, 4  ;;  %vm824_vm3 = vcmask 7168   ;;  %s832_s15 = int_to_ptr.vmem [resolvable:$true] %s831_s15  ;;  %s834_s17 = int_to_ptr.hbm [resolvable:$true] %s833_s17 }
  0x22   :  { %167 = vmatpush.msra.mxu1 %v144_v1  ;;  %v179_v8 = vld [vmem:[#allocation10 + $0x20] sm:$0xff]  ;;  %v178_v9 = vld [vmem:[#allocation10 + $0x18] sm:$0xff]  ;;  %v177_v10 = vld [vmem:[#allocation10 + $0x10] sm:$0xff] }
  0x23   :  { %v176_v11 = vld [vmem:[#allocation10 + $0x8] sm:$0xff]  ;;  %v175_v12 = vld [vmem:[#allocation10] sm:$0xff]  ;;  %v220_v13 = vld [vmem:[#allocation10 + $0x78] sm:$0xff] }
  0x24   :  { %168 = vmatpush.msra.mxu1 %v143_v2  ;;  %v219_v14 = vld [vmem:[#allocation10 + $0x70] sm:$0xff]  ;;  %237 = vmatpush.msra.mxu2 %v220_v13  ;;  %v218_v15 = vld [vmem:[#allocation10 + $0x68] sm:$0xff]  ;;  %v217_v16 = vld [vmem:[#allocation10 + $0x60] sm:$0xff] }
  0x25   :  { %v216_v17 = vld [vmem:[#allocation10 + $0x58] sm:$0xff]  ;;  %v215_v22 = vld [vmem:[#allocation10 + $0x50] sm:$0xff]  ;;  %v214_v23 = vld [vmem:[#allocation10 + $0x48] sm:$0xff] }
  0x26   :  { %169 = vmatpush.msra.mxu1 %v142_v3  ;;  %238 = vmatpush.msra.mxu2 %v219_v14  ;;  %v888_v18 = vld [vmem:[#allocation8] ss:$0 sm:$0xff]  ;;  %v213_v24 = vld [vmem:[#allocation10 + $0x40] sm:$0xff]  ;;  %v255_v27 = vld [vmem:[#allocation13 + $0x28] sm:$0xff] }
  0x27   :  { %850 = vmatmul.msk.f32.vlgmr.msra.gmra.mxu1 %vm150_vm0, %v1214_v4  ;;  %v257_v25 = vld [vmem:[#allocation13 + $0x38] sm:$0xff]  ;;  %v256_v26 = vld [vmem:[#allocation13 + $0x30] sm:$0xff]  ;;  %v254_v28 = vld [vmem:[#allocation13 + $0x20] sm:$0xff] }
  0x28   :  { %199 = vmatpush.msrb.mxu1 %v182_v5  ;;  %239 = vmatpush.msra.mxu2 %v218_v15  ;;  %v253_v29 = vld [vmem:[#allocation13 + $0x18] sm:$0xff]  ;;  %v252_v34 = vld [vmem:[#allocation13 + $0x10] sm:$0xff]  ;;  %v251_v35 = vld [vmem:[#allocation13 + $0x8] sm:$0xff] }
  0x29   :  { %273 = vmatpush.msra.mxu3 %v257_v25  ;;  %v889_v30 = vld [vmem:[#allocation11] ss:$0 sm:$0xff]  ;;  %v250_v36 = vld [vmem:[#allocation13] sm:$0xff]  ;;  %v890_v37 = vld [vmem:[#allocation11 + $0x1] ss:$0 sm:$0xff] }
  0x2a   :  { %200 = vmatpush.msrb.mxu1 %v181_v6  ;;  %240 = vmatpush.msra.mxu2 %v217_v16  ;;  %v302_v41 = vld [vmem:[#allocation7 + $0x38] sm:$0xff]  ;;  %v301_v42 = vld [vmem:[#allocation7 + $0x30] sm:$0xff]  ;;  %v300_v43 = vld [vmem:[#allocation7 + $0x28] sm:$0xff] }
  0x2b   :  { %274 = vmatpush.msra.mxu3 %v256_v26  ;;  %323 = vmatpush.msra.mxu0 %v302_v41  ;;  %v891_v44 = vld [vmem:[%s1299_s7] ss:$0 sm:$0xff]  ;;  %v299_v47 = vld [vmem:[#allocation7 + $0x20] sm:$0xff]  ;;  %v339_v49 = vld [vmem:[#allocation10 + $0xb0] sm:$0xff] }
  0x2c   :  { %201 = vmatpush.msrb.mxu1 %v180_v7  ;;  %241 = vmatpush.msra.mxu2 %v216_v17  ;;  %v340_v48 = vld [vmem:[#allocation10 + $0xb8] sm:$0xff]  ;;  %v338_v50 = vld [vmem:[#allocation10 + $0xa8] sm:$0xff]  ;;  %v337_v51 = vld [vmem:[#allocation10 + $0xa0] sm:$0xff] }
  0x2d   :  { %275 = vmatpush.msra.mxu3 %v255_v27  ;;  %324 = vmatpush.msra.mxu0 %v301_v42  ;;  %v336_v52 = vld [vmem:[#allocation10 + $0x98] sm:$0xff]  ;;  %v335_v60 = vld [vmem:[#allocation10 + $0x90] sm:$0xff]  ;;  %v334_v61 = vld [vmem:[#allocation10 + $0x88] sm:$0xff] }
  0x2e   :  { %202 = vmatpush.msrb.mxu1 %v179_v8  ;;  %242 = vmatpush.msra.mxu2 %v215_v22  ;;  %v141_v56 = vld [vmem:[#allocation5] sm:$0xff]  ;;  %v333_v62 = vld [vmem:[#allocation10 + $0x80] sm:$0xff]  ;;  %v376_v1 = vld [vmem:[#allocation10 + $0xe8] sm:$0xff] }
  0x2f   :  { %276 = vmatpush.msra.mxu3 %v254_v28  ;;  %325 = vmatpush.msra.mxu0 %v300_v43  ;;  %v378_v63 = vld [vmem:[#allocation10 + $0xf8] sm:$0xff]  ;;  %v377_v0 = vld [vmem:[#allocation10 + $0xf0] sm:$0xff]  ;;  %v375_v2 = vld [vmem:[#allocation10 + $0xe0] sm:$0xff] }
  0x30   :  { %203 = vmatpush.msrb.mxu1 %v178_v9  ;;  %243 = vmatpush.msra.mxu2 %v214_v23  ;;  %v374_v3 = vld [vmem:[#allocation10 + $0xd8] sm:$0xff]  ;;  %v373_v9 = vld [vmem:[#allocation10 + $0xd0] sm:$0xff]  ;;  %v413_v15 = vld [vmem:[#allocation13 + $0x60] sm:$0xff] }
  0x31   :  { %277 = vmatpush.msra.mxu3 %v253_v29  ;;  %326 = vmatpush.msra.mxu0 %v299_v47  ;;  %v892_v5 = vld [vmem:[#allocation8 + $0x1] ss:$0 sm:$0xff]  ;;  %v414_v14 = vld [vmem:[#allocation13 + $0x68] sm:$0xff]  ;;  %v412_v16 = vld [vmem:[#allocation13 + $0x58] sm:$0xff] }
  0x32   :  { %204 = vmatpush.msrb.mxu1 %v177_v10  ;;  %244 = vmatpush.msra.mxu2 %v213_v24  ;;  %v372_v10 = vld [vmem:[#allocation10 + $0xc8] sm:$0xff]  ;;  %v415_v13 = vld [vmem:[#allocation13 + $0x70] sm:$0xff]  ;;  %v893_v17 = vld [vmem:[#allocation11 + $0x2] ss:$0 sm:$0xff] }
  0x33   :  { %278 = vmatpush.msra.mxu3 %v252_v34  ;;  %357 = vmatpush.msrb.mxu0 %v340_v48  ;;  %v410_v22 = vld [vmem:[#allocation13 + $0x48] sm:$0xff]  ;;  %v409_v23 = vld [vmem:[#allocation13 + $0x40] sm:$0xff]  ;;  %v894_v24 = vld [vmem:[#allocation11 + $0x3] ss:$0 sm:$0xff] }
  0x34   :  { %205 = vmatpush.msrb.mxu1 %v176_v11  ;;  %v371_v11 = vld [vmem:[#allocation10 + $0xc0] sm:$0xff]  ;;  %v895_v28 = vld [vmem:[%s1299_s7 + $0x1] ss:$0 sm:$0xff]  ;;  %v500_v42 = vld [vmem:[#allocation10 + $0x138] sm:$0xff] }
  0x35   :  { %279 = vmatpush.msra.mxu3 %v251_v35  ;;  %358 = vmatpush.msrb.mxu0 %v339_v49  ;;  %v459_v35 = vld [vmem:[#allocation7 + $0x40] sm:$0xff]  ;;  %v499_v43 = vld [vmem:[#allocation10 + $0x130] sm:$0xff]  ;;  %v494_v48 = vld [vmem:[#allocation10 + $0x108] sm:$0xff] }
  0x36   :  { %206 = vmatpush.msrb.mxu1 %v175_v12  ;;  %v416_v12 = vld [vmem:[#allocation13 + $0x78] sm:$0xff]  ;;  %v495_v47 = vld [vmem:[#allocation10 + $0x110] sm:$0xff]  ;;  %v538_v49 = vld [vmem:[#allocation10 + $0x178] sm:$0xff] }
  0x37   :  { %280 = vmatpush.msra.mxu3 %v250_v36  ;;  %359 = vmatpush.msrb.mxu0 %v338_v50  ;;  %v537_v50 = vld [vmem:[#allocation10 + $0x170] sm:$0xff] }
  0x38   :  { %395 = vmatpush.msra.mxu1 %v378_v63  ;;  %433 = vmatpush.msrb.mxu2 %v416_v12  ;;  %v575_v63 = vld [vmem:[#allocation13 + $0xb0] sm:$0xff] }
  0x39   :  { %360 = vmatpush.msrb.mxu0 %v337_v51  ;;  %v536_v51 = vld [vmem:[#allocation10 + $0x168] sm:$0xff] }
  0x3a   :  { %396 = vmatpush.msra.mxu1 %v377_v0  ;;  %434 = vmatpush.msrb.mxu2 %v415_v13  ;;  %v574_v0 = vld [vmem:[#allocation13 + $0xa8] sm:$0xff] }
  0x3b   :  { %361 = vmatpush.msrb.mxu0 %v336_v52  ;;  %v535_v52 = vld [vmem:[#allocation10 + $0x160] sm:$0xff] }
  0x3c   :  { %397 = vmatpush.msra.mxu1 %v376_v1  ;;  %435 = vmatpush.msrb.mxu2 %v414_v14  ;;  %v573_v1 = vld [vmem:[#allocation13 + $0xa0] sm:$0xff] }
  0x3d   :  { %362 = vmatpush.msrb.mxu0 %v335_v60  ;;  %v532_v60 = vld [vmem:[#allocation10 + $0x148] sm:$0xff] }
  0x3e   :  { %398 = vmatpush.msra.mxu1 %v375_v2  ;;  %436 = vmatpush.msrb.mxu2 %v413_v15  ;;  %v572_v2 = vld [vmem:[#allocation13 + $0x98] sm:$0xff]  ;;  %v899_v15 = vld [vmem:[%s1299_s7 + $0x2] ss:$0 sm:$0xff] }
  0x3f   :  { %363 = vmatpush.msrb.mxu0 %v334_v61  ;;  %v531_v61 = vld [vmem:[#allocation10 + $0x140] sm:$0xff] }
  0x40   :  { %399 = vmatpush.msra.mxu1 %v374_v3  ;;  %437 = vmatpush.msrb.mxu2 %v412_v16  ;;  %v897_v3 = vld [vmem:[#allocation11 + $0x4] ss:$0 sm:$0xff] }
  0x41   :  { %364 = vmatpush.msrb.mxu0 %v333_v62  ;;  %v576_v62 = vld [vmem:[#allocation13 + $0xb8] sm:$0xff] }
  0x42   :  { %400 = vmatpush.msra.mxu1 %v373_v9  ;;  %v570_v9 = vld [vmem:[#allocation13 + $0x88] sm:$0xff] }
  0x44   :  { %401 = vmatpush.msra.mxu1 %v372_v10  ;;  %v569_v10 = vld [vmem:[#allocation13 + $0x80] sm:$0xff] }
  0x46   :  { %402 = vmatpush.msra.mxu1 %v371_v11  ;;  %v898_v11 = vld [vmem:[#allocation11 + $0x5] ss:$0 sm:$0xff] }
  0xa4   :  { %v171_v19 = vpop.f32.mrf.mxu1 }
  0xa5   :  { %v172_v20 = vadd.f32 %v888_v18, %v171_v19 }
  0xa7   :  { %v174_v21 = vmax.f32 %v172_v20, 0.0 }
  0xa9   :  { %851 = vmatmul.msk.f32.vlgmr.msrb.gmra.mxu1 %vm187_vm1, %v174_v21  ;;  %v411_v21 = vld [vmem:[#allocation13 + $0x50] sm:$0xff] }
  0xaa   :  { %438 = vmatpush.msrb.mxu2 %v411_v21  ;;  %593 = vmatpush.msrb.mxu1 %v576_v62  ;;  %v1259_v21 = vld [vmem:[%s1300_s8] sm:$0x1]  ;;  %v730_v62 = vld [vmem:[#allocation13 + $0xc8] sm:$0xff] }
  0xac   :  { %439 = vmatpush.msrb.mxu2 %v410_v22  ;;  %594 = vmatpush.msrb.mxu1 %v575_v63  ;;  %v809_v22 = vsel %vm808_vm2, %v1259_v21, 0.0  ;;  %v729_v63 = vld [vmem:[#allocation13 + $0xc0] sm:$0xff] }
  0xae   :  { %440 = vmatpush.msrb.mxu2 %v409_v23  ;;  %595 = vmatpush.msrb.mxu1 %v574_v0  ;;  %v902_v0 = vld [vmem:[#allocation11 + $0x7] ss:$0 sm:$0xff] }
  0xb0   :  { %596 = vmatpush.msrb.mxu1 %v573_v1 }
  0xb2   :  { %597 = vmatpush.msrb.mxu1 %v572_v2 }
 0x126   :  { %v208_v31 = vpop.f32.mrf.mxu1 }
 0x127   :  { %v209_v32 = vadd.f32 %v889_v30, %v208_v31  ;;  %v462_v31 = vld [vmem:[#allocation7 + $0x58] sm:$0xff] }
 0x128   :  { %483 = vmatpush.msrb.mxu3 %v462_v31  ;;  %v660_v31 = vld [vmem:[#allocation10 + $0x1b8] sm:$0xff] }
 0x129   :  { %v211_v33 = vmax.f32 %v209_v32, 0.0  ;;  %v461_v32 = vld [vmem:[#allocation7 + $0x50] sm:$0xff] }
 0x12a   :  { %484 = vmatpush.msrb.mxu3 %v461_v32  ;;  %v659_v32 = vld [vmem:[#allocation10 + $0x1b0] sm:$0xff] }
 0x12b   :  { %852 = vmatmul.msk.f32.vlgmr.msra.gmra.mxu2 %vm187_vm1, %v211_v33  ;;  %v460_v33 = vld [vmem:[#allocation7 + $0x48] sm:$0xff] }
 0x12c   :  { %485 = vmatpush.msrb.mxu3 %v460_v33  ;;  %v658_v33 = vld [vmem:[#allocation10 + $0x1a8] sm:$0xff] }
 0x12e   :  { %486 = vmatpush.msrb.mxu3 %v459_v35  ;;  %v656_v35 = vld [vmem:[#allocation10 + $0x198] sm:$0xff] }
 0x1ae   :  { %v246_v38 = vpop.f32.mrf.mxu2 }
 0x1af   :  { %v247_v39 = vadd.f32 %v890_v37, %v246_v38 }
 0x1b1   :  { %v249_v40 = vmax.f32 %v247_v39, 0.0 }
 0x1b3   :  { %853 = vmatmul.msk.f32.vlgmr.msra.gmra.mxu3 %vm187_vm1, %v249_v40 }
 0x1b4   :  { %517 = vmatpush.msra.mxu3 %v500_v42  ;;  %v696_v42 = vld [vmem:[#allocation10 + $0x1e8] sm:$0xff] }
 0x1b6   :  { %518 = vmatpush.msra.mxu3 %v499_v43  ;;  %v695_v43 = vld [vmem:[#allocation10 + $0x1e0] sm:$0xff] }
 0x236   :  { %v282_v45 = vpop.f32.mrf.mxu3 }
 0x237   :  { %v283_v46 = vadd.f32 %v891_v44, %v282_v45  ;;  %v498_v44 = vld [vmem:[#allocation10 + $0x128] sm:$0xff]  ;;  %v497_v45 = vld [vmem:[#allocation10 + $0x120] sm:$0xff] }
 0x238   :  { %519 = vmatpush.msra.mxu3 %v498_v44  ;;  %v694_v44 = vld [vmem:[#allocation10 + $0x1d8] sm:$0xff] }
 0x239   :  { %290 = vrot.lane.b32.xlu0 %v283_v46, %s1135_s1  ;;  %904 = vtanh.f32 %v283_v46  ;;  %v496_v46 = vld [vmem:[#allocation10 + $0x118] sm:$0xff] }
 0x23a   :  { %520 = vmatpush.msra.mxu3 %v497_v45  ;;  %v900_v45 = vld [vmem:[#allocation8 + $0x3] ss:$0 sm:$0xff] }
 0x23c   :  { %521 = vmatpush.msra.mxu3 %v496_v46 }
 0x23e   :  { %522 = vmatpush.msra.mxu3 %v495_v47 }
 0x23f   :  { %v1225_v53 = vpop.eup %904 }
 0x240   :  { %v286_v54 = vmul.f32 1.442695, %v1225_v53  ;;  %v294_v34 = vsel %vm150_vm0, %v1225_v53, 0.0  ;;  %523 = vmatpush.msra.mxu3 %v494_v48  ;;  %v534_v53 = vld [vmem:[#allocation10 + $0x158] sm:$0xff] }
 0x242   :  { %906 = vpow2.f32 %v286_v54  ;;  %v896_v54 = vld [vmem:[#allocation8 + $0x2] ss:$0 sm:$0xff] }
 0x248   :  { %v907_v55 = vpop.eup %906 }
 0x249   :  { %v288_v57 = vmul.f32 %v907_v55, %v141_v56 }
 0x2ab   :  { %v291_v58 = vpop.permute.xlu0 %290 }
 0x2ac   :  { %v1228_v59 = vadd.f32 %v291_v58, %v288_v57  ;;  %v533_v58 = vld [vmem:[#allocation10 + $0x150] sm:$0xff] }
 0x2ae   :  { %854 = vmatmul.msk.f32.vlgmr.msra.gmra.mxu0 %vm150_vm0, %v1228_v59 }
 0x2af   :  { %555 = vmatpush.msra.mxu0 %v538_v49  ;;  %v692_v49 = vld [vmem:[#allocation10 + $0x1c8] sm:$0xff] }
 0x2b1   :  { %556 = vmatpush.msra.mxu0 %v537_v50  ;;  %v691_v50 = vld [vmem:[#allocation10 + $0x1c0] sm:$0xff] }
 0x2b3   :  { %557 = vmatpush.msra.mxu0 %v536_v51  ;;  %v736_v51 = vld [vmem:[#allocation13 + $0xf8] sm:$0xff] }
 0x2b5   :  { %558 = vmatpush.msra.mxu0 %v535_v52  ;;  %v735_v52 = vld [vmem:[#allocation13 + $0xf0] sm:$0xff] }
 0x2b7   :  { %559 = vmatpush.msra.mxu0 %v534_v53  ;;  %v734_v53 = vld [vmem:[#allocation13 + $0xe8] sm:$0xff] }
 0x2b9   :  { %560 = vmatpush.msra.mxu0 %v533_v58 }
 0x2bb   :  { %561 = vmatpush.msra.mxu0 %v532_v60 }
 0x2bd   :  { %562 = vmatpush.msra.mxu0 %v531_v61  ;;  %v731_v61 = vld [vmem:[#allocation13 + $0xd0] sm:$0xff] }
 0x32b   :  { %v328_v6 = vpop.f32.mrf.mxu0 }
 0x32c   :  { %v329_v7 = vadd.f32 %v892_v5, %v328_v6 }
 0x32e   :  { %v331_v8 = vmax.f32 %v329_v7, 0.0 }
 0x330   :  { %855 = vmatmul.msk.f32.vlgmr.msrb.gmra.mxu0 %vm187_vm1, %v331_v8  ;;  %v571_v8 = vld [vmem:[#allocation13 + $0x90] sm:$0xff] }
 0x331   :  { %598 = vmatpush.msrb.mxu1 %v571_v8  ;;  %753 = vmatpush.msrb.mxu0 %v736_v51 }
 0x333   :  { %599 = vmatpush.msrb.mxu1 %v570_v9  ;;  %754 = vmatpush.msrb.mxu0 %v735_v52 }
 0x335   :  { %600 = vmatpush.msrb.mxu1 %v569_v10  ;;  %755 = vmatpush.msrb.mxu0 %v734_v53 }
 0x3ad   :  { %v366_v18 = vpop.f32.mrf.mxu0 }
 0x3ae   :  { %v367_v19 = vadd.f32 %v893_v17, %v366_v18  ;;  %v622_v18 = vld [vmem:[#allocation7 + $0x78] sm:$0xff] }
 0x3af   :  { %643 = vmatpush.msra.mxu2 %v622_v18 }
 0x3b0   :  { %v369_v20 = vmax.f32 %v367_v19, 0.0  ;;  %v621_v19 = vld [vmem:[#allocation7 + $0x70] sm:$0xff] }
 0x3b1   :  { %644 = vmatpush.msra.mxu2 %v621_v19 }
 0x3b2   :  { %856 = vmatmul.msk.f32.vlgmr.msra.gmra.mxu1 %vm187_vm1, %v369_v20  ;;  %v620_v20 = vld [vmem:[#allocation7 + $0x68] sm:$0xff] }
 0x3b3   :  { %645 = vmatpush.msra.mxu2 %v620_v20 }
 0x42f   :  { %v404_v25 = vpop.f32.mrf.mxu1 }
 0x430   :  { %v405_v26 = vadd.f32 %v894_v24, %v404_v25  ;;  %v619_v25 = vld [vmem:[#allocation7 + $0x60] sm:$0xff] }
 0x431   :  { %646 = vmatpush.msra.mxu2 %v619_v25 }
 0x432   :  { %v407_v27 = vmax.f32 %v405_v26, 0.0 }
 0x434   :  { %858 = vmatmul.msk.f32.vlgmr.msrb.gmra.mxu2 %vm187_vm1, %v407_v27 }
 0x435   :  { %677 = vmatpush.msrb.mxu2 %v660_v31 }
 0x437   :  { %678 = vmatpush.msrb.mxu2 %v659_v32 }
 0x439   :  { %679 = vmatpush.msrb.mxu2 %v658_v33 }
 0x4b7   :  { %v442_v29 = vpop.f32.mrf.mxu2 }
 0x4b8   :  { %v443_v30 = vadd.f32 %v895_v28, %v442_v29 }
 0x4ba   :  { %450 = vrot.lane.b32.xlu0 %v443_v30, %s1135_s1  ;;  %908 = vtanh.f32 %v443_v30 }
 0x4c0   :  { %v1241_v36 = vpop.eup %908 }
 0x4c1   :  { %v446_v37 = vmul.f32 1.442695, %v1241_v36 }
 0x4c3   :  { %910 = vpow2.f32 %v446_v37  ;;  %v655_v37 = vld [vmem:[#allocation10 + $0x190] sm:$0xff] }
 0x4c9   :  { %v911_v38 = vpop.eup %910 }
 0x4ca   :  { %v448_v39 = vmul.f32 %v911_v38, %v1214_v4  ;;  %v493_v4 = vld [vmem:[#allocation10 + $0x100] sm:$0xff]  ;;  %v654_v38 = vld [vmem:[#allocation10 + $0x188] sm:$0xff] }
 0x4cb   :  { %524 = vmatpush.msra.mxu3 %v493_v4  ;;  %v693_v4 = vld [vmem:[#allocation10 + $0x1d0] sm:$0xff] }
 0x4e4   :  { %295 = vadd.xlane.f32.xlu0 %v294_v34  ;;  %v657_v34 = vld [vmem:[#allocation10 + $0x1a0] sm:$0xff] }
 0x4e5   :  { %680 = vmatpush.msrb.mxu2 %v657_v34 }
 0x4e7   :  { %681 = vmatpush.msrb.mxu2 %v656_v35 }
 0x4e9   :  { %682 = vmatpush.msrb.mxu2 %v655_v37 }
 0x4eb   :  { %683 = vmatpush.msrb.mxu2 %v654_v38 }
 0x52c   :  { %v451_v40 = vpop.permute.xlu0 %450 }
 0x52d   :  { %v1245_v41 = vadd.f32 %v451_v40, %v448_v39  ;;  %v698_v39 = vld [vmem:[#allocation10 + $0x1f8] sm:$0xff]  ;;  %v697_v40 = vld [vmem:[#allocation10 + $0x1f0] sm:$0xff] }
 0x52f   :  { %859 = vmatmul.msk.f32.vlgmr.msrb.gmra.mxu3 %vm150_vm0, %v1245_v41 }
 0x530   :  { %715 = vmatpush.msrb.mxu3 %v698_v39 }
 0x532   :  { %716 = vmatpush.msrb.mxu3 %v697_v40 }
 0x534   :  { %717 = vmatpush.msrb.mxu3 %v696_v42 }
 0x536   :  { %718 = vmatpush.msrb.mxu3 %v695_v43 }
 0x538   :  { %719 = vmatpush.msrb.mxu3 %v694_v44 }
 0x53a   :  { %720 = vmatpush.msrb.mxu3 %v693_v4 }
 0x53c   :  { %721 = vmatpush.msrb.mxu3 %v692_v49 }
 0x53e   :  { %722 = vmatpush.msrb.mxu3 %v691_v50 }
 0x557   :  { %v296_v38 = vpop.xlane.xlu0 %295 }
 0x5b2   :  { %v488_v55 = vpop.f32.mrf.mxu3 }
 0x5b3   :  { %v489_v56 = vadd.f32 %v896_v54, %v488_v55  ;;  %v733_v54 = vld [vmem:[#allocation13 + $0xe0] sm:$0xff]  ;;  %v732_v55 = vld [vmem:[#allocation13 + $0xd8] sm:$0xff] }
 0x5b4   :  { %756 = vmatpush.msrb.mxu0 %v733_v54 }
 0x5b5   :  { %v491_v57 = vmax.f32 %v489_v56, 0.0  ;;  %v901_v56 = vld [vmem:[#allocation11 + $0x6] ss:$0 sm:$0xff] }
 0x5b6   :  { %757 = vmatpush.msrb.mxu0 %v732_v55 }
 0x5b7   :  { %860 = vmatmul.msk.f32.vlgmr.msra.gmra.mxu3 %vm187_vm1, %v491_v57 }
 0x5b8   :  { %758 = vmatpush.msrb.mxu0 %v731_v61 }
 0x5ba   :  { %759 = vmatpush.msrb.mxu0 %v730_v62 }
 0x5bc   :  { %760 = vmatpush.msrb.mxu0 %v729_v63 }
 0x63a   :  { %v526_v5 = vpop.f32.mrf.mxu3 }
 0x63b   :  { %v527_v6 = vadd.f32 %v897_v3, %v526_v5  ;;  %v779_v5 = vmul.f32 1.442695, %v1259_v21 }
 0x63d   :  { %v529_v7 = vmax.f32 %v527_v6, 0.0  ;;  %v903_v6 = vld [vmem:[%s1299_s7 + $0x3] ss:$0 sm:$0xff]  ;;  %s1136_s7 = smov 32  }
 0x63f   :  { %861 = vmatmul.msk.f32.vlgmr.msra.gmra.mxu0 %vm187_vm1, %v529_v7 }
 0x6bc   :  { %v564_v12 = vpop.f32.mrf.mxu0 }
 0x6bd   :  { %v565_v13 = vadd.f32 %v898_v11, %v564_v12  ;;  %v454_v11 = vsel %vm150_vm0, %v1241_v36, 0.0 }
 0x6bf   :  { %v567_v14 = vmax.f32 %v565_v13, 0.0 }
 0x6c1   :  { %863 = vmatmul.msk.f32.vlgmr.msrb.gmra.mxu1 %vm187_vm1, %v567_v14 }
 0x73e   :  { %v602_v16 = vpop.f32.mrf.mxu1 }
 0x73f   :  { %v603_v17 = vadd.f32 %v899_v15, %v602_v16 }
 0x741   :  { %610 = vrot.lane.b32.xlu1 %v603_v17, %s1135_s1  ;;  %912 = vtanh.f32 %v603_v17 }
 0x747   :  { %v913_v23 = vpop.eup %912 }
 0x748   :  { %v614_v24 = vsel %vm150_vm0, %v913_v23, 0.0  ;;  %v606_v26 = vmul.f32 1.442695, %v913_v23 }
 0x74a   :  { %914 = vpow2.f32 %v606_v26 }
 0x74b   :  { %916 = vpow2.f32 %v779_v5 }
 0x750   :  { %v915_v27 = vpop.eup %914 }
 0x751   :  { %v608_v28 = vmul.f32 %v915_v27, %v1228_v59  ;;  %v653_v59 = vld [vmem:[#allocation10 + $0x180] sm:$0xff]  ;;  %v917_v9 = vpop.eup %916 }
 0x752   :  { %684 = vmatpush.msrb.mxu2 %v653_v59  ;;  %v782_v10 = vperm.slane %v917_v9, 0 }
 0x76b   :  { %810 = vadd.xlane.f32.xlu1 %v809_v22 }
 0x773   :  { %615 = vadd.xlane.f32.xlu1 %v614_v24 }
 0x7b3   :  { %v611_v29 = vpop.permute.xlu1 %610 }
 0x7b4   :  { %v1264_v30 = vadd.f32 %v611_v29, %v608_v28 }
 0x7b6   :  { %864 = vmatmul.msk.f32.vlgmr.msra.gmra.mxu2 %vm150_vm0, %v1264_v30 }
 0x7de   :  { %v811_v14 = vpop.xlane.xlu1 %810 }
 0x7df   :  { %v812_v15 = vrot.slane %v811_v14, 4 }
 0x7e1   :  { %v813_v16 = vadd.f32 %v812_v15, %v811_v14 }
 0x7e3   :  { %v814_v17 = vrot.slane %v813_v16, 2 }
 0x7e5   :  { %v815_v19 = vadd.f32 %v814_v17, %v813_v16 }
 0x7e7   :  { %v816_v20 = vrot.slane %v815_v19, 1 }
 0x7e9   :  { %v817_v21 = vadd.f32 %v816_v20, %v815_v19 }
 0x7eb   :  { %872 = vpush %v817_v21 }
 0x81c   :  { %s873_s13 = spop %872 }
 0x81d   :  { %v819_v39 = vstv %s873_s13 }
 0x81e   :  { %v820_v44 = vadd.f32 1e-10, %v819_v39 }
 0x839   :  { %v648_v46 = vpop.f32.mrf.mxu2 }
 0x83a   :  { %v649_v47 = vadd.f32 %v900_v45, %v648_v46 }
 0x83c   :  { %v651_v48 = vmax.f32 %v649_v47, 0.0 }
 0x83e   :  { %865 = vmatmul.msk.f32.vlgmr.msrb.gmra.mxu2 %vm187_vm1, %v651_v48 }
 0x8c1   :  { %v686_v57 = vpop.f32.mrf.mxu2 }
 0x8c2   :  { %v687_v58 = vadd.f32 %v901_v56, %v686_v57 }
 0x8c4   :  { %v689_v60 = vmax.f32 %v687_v58, 0.0 }
 0x8c6   :  { %866 = vmatmul.msk.f32.vlgmr.msrb.gmra.mxu3 %vm187_vm1, %v689_v60 }
 0x949   :  { %v724_v1 = vpop.f32.mrf.mxu3 }
 0x94a   :  { %v725_v2 = vadd.f32 %v902_v0, %v724_v1 }
 0x94c   :  { %v727_v3 = vmax.f32 %v725_v2, 0.0 }
 0x94e   :  { %868 = vmatmul.msk.f32.vlgmr.msrb.gmra.mxu0 %vm187_vm1, %v727_v3 }
 0x9cb   :  { %v762_v7 = vpop.f32.mrf.mxu0 }
 0x9cc   :  { %v763_v8 = vadd.f32 %v903_v6, %v762_v7 }
 0x9ce   :  { %770 = vrot.lane.b32.xlu2 %v763_v8, %s1135_s1  ;;  %918 = vtanh.f32 %v763_v8 }
 0x9d4   :  { %v919_v12 = vpop.eup %918 }
 0x9d5   :  { %v774_v13 = vsel %vm150_vm0, %v919_v12, 0.0  ;;  %v766_v18 = vmul.f32 1.442695, %v919_v12 }
 0x9d6   :  { %785 = vrot.lane.b32.xlu2 %v782_v10, %s1135_s1 }
 0x9d7   :  { %920 = vpow2.f32 %v766_v18 }
 0x9dd   :  { %v921_v22 = vpop.eup %920 }
 0x9de   :  { %v768_v23 = vmul.f32 %v921_v22, %v1245_v41 }
 0x9ff   :  { %455 = vadd.xlane.f32.xlu2 %v454_v11 }
 0xa07   :  { %775 = vadd.xlane.f32.xlu2 %v774_v13 }
 0xa28   :  { %v771_v24 = vpop.permute.xlu2 %770 }
 0xa29   :  { %v773_v36 = vadd.f32 %v771_v24, %v768_v23 }
 0xa2b   :  { %v784_v25 = vmul.f32 %v782_v10, %v773_v36 }
 0xa2d   :  { %v795_v26 = vmul.f32 -0.5, %v784_v25 }
 0xa2f   :  { %v796_v27 = vmul.f32 %v795_v26, %v784_v25 }
 0xa30   :  { %v786_v28 = vpop.permute.xlu2 %785 }
 0xa31   :  { %v788_v29 = vmul.f32 %v786_v28, %v1264_v30  ;;  %v869_v31 = vadd.f32 -0.9189385, %v796_v27  ;;  %v616_v30 = vpop.xlane.xlu1 %615 }
 0xa33   :  { %790 = vrot.lane.b32.xlu0 %v788_v29, %s1136_s7  ;;  %v798_v32 = vsel %vm150_vm0, %v869_v31, 0.0  ;;  %v801_v33 = vmul.f32 -0.5, %v788_v29 }
 0xa34   :  { %799 = vadd.xlane.f32.xlu1 %v798_v32 }
 0xa35   :  { %v802_v34 = vmul.f32 %v801_v33, %v788_v29 }
 0xa37   :  { %v870_v35 = vadd.f32 -0.9189385, %v802_v34 }
 0xa39   :  { %v804_v37 = vsel %vm150_vm0, %v870_v35, 0.0 }
 0xa3a   :  { %805 = vadd.xlane.f32.xlu2 %v804_v37 }
 0xa72   :  { %v456_v41 = vpop.xlane.xlu2 %455 }
 0xa73   :  { %v457_v59 = vadd.f32 %v456_v41, %v296_v38 }
 0xa75   :  { %v617_v42 = vadd.f32 %v616_v30, %v457_v59 }
 0xa7a   :  { %v776_v40 = vpop.xlane.xlu2 %775 }
 0xa7b   :  { %v777_v45 = vadd.f32 %v776_v40, %v617_v42 }
 0xa7d   :  { %v821_v47 = vadd.f32 %v820_v44, %v777_v45 }
 0xa7f   :  { %v871_v49 = vadd.f32 -354.89136, %v821_v47 }
 0xaa5   :  { %v791_v43 = vpop.permute.xlu0 %790 }
 0xaa6   :  { %v793_v46 = vsel %vm150_vm0, %v784_v25, %v791_v43 }
 0xaa7   :  { %794 = vst.msk [vmem:[#allocation14] sm:$0xff] %vm187_vm1, %v793_v46  ;;  %v800_v48 = vpop.xlane.xlu1 %799 }
 0xaa8   :  { %836 = dma.vmem_to_hbm [thread:$0]  %s832_s15, 128, %s834_s17, [#allocation4]  }
 0xaad   :  { %v806_v4 = vpop.xlane.xlu2 %805 }
 0xaae   :  { %v807_v50 = vadd.f32 %v806_v4, %v800_v48 }
 0xab0   :  { %v823_v51 = vadd.f32 %v871_v49, %v807_v50 }
 0xab2   :  { %825 = vst.msk [vmem:[%s1302_s10] sm:$0xff] %vm824_vm3, %v823_v51 }
 0xab3   :  { %1122 = dma.done.wait [#allocation4], 128  }
 0xab4   :  { %1123 = vsyncadd [#allocation4], 4294967168 }
 0xab5   :  { %845 = vsyncpa [#allocation3], 1 }
 0xab6   :  { %846 = vsyncpa [#allocation6], 1 }
 0xab7   :  { %847 = vsyncpa [#allocation9], 1 }
 0xab8   :  { %848 = vsyncpa [#allocation12], 1 }
 0xab9   :  { %849 = vsyncpa [#allocation4], 1 }

</bundles_post_ra>
